<compile_context>
chip_gen: v7x
topology: tpu7x:2x2x1
jax: 0.10.0
libtpu: 0.0.40
codegen_flags: <defaults>
</compile_context>

<pallas_src>
import functools

import jax
import jax.numpy as jnp
from jax.experimental import pallas as pl
from jax.experimental.pallas import tpu as pltpu


# --------------------------- hardware-aware sizing ----------------------------

def _ceil_to(x, m):
    return ((x + m - 1) // m) * m


def _round_down(x, m):
    return (x // m) * m


def _vmem_capacity_bytes():
    try:
        info = pltpu.get_tpu_info()
        cap = int(getattr(info, "vmem_capacity_bytes", 0) or 0)
        if cap >= 16 * 1024 * 1024:
            return cap
    except Exception:
        pass
    return 64 * 1024 * 1024  # conservative: v7x per-TensorCore VMEM


def _budgets(max_resident_bytes, block_budget_bytes):
    vmem_cap = _vmem_capacity_bytes()
    vmem_limit = min(int(vmem_cap * 0.8), 100 * 1024 * 1024)
    if max_resident_bytes is None:
        max_resident_bytes = vmem_cap // 8        # padded f32 bytes of x
    if block_budget_bytes is None:
        # ~8 MiB blocks on 64-MiB-VMEM parts (v7x), ~16 MiB on 128-MiB parts.
        block_budget_bytes = (8 if vmem_cap <= 64 * 1024 * 1024 else 16) * 1024 * 1024
    return vmem_limit, max_resident_bytes, block_budget_bytes


def _tiles_3d(N, C, L, itemsize, block_budget):
    sub_unit = max(8, 32 // itemsize)             # dtype-aware sublane packing
    tile_l = L if L < 128 else _round_down(min(L, 8192), 128)
    tile_c = C if C < sub_unit else _round_down(min(C, 512), sub_unit)
    # Keep >= 2 channel blocks when possible so the "parallel" axis can be
    # sharded across v7x's two TensorCores in the stats pass.
    if C >= 2 * sub_unit and pl.cdiv(C, tile_c) < 2:
        tile_c = max(sub_unit, _round_down(C // 2, sub_unit))
    pad_c, pad_l = _ceil_to(tile_c, 8), _ceil_to(tile_l, 128)
    while pad_c * pad_l * itemsize > block_budget and (tile_l > 128 or tile_c > sub_unit):
        if tile_l > 128:
            tile_l = max(128, _round_down(tile_l // 2, 128))
        else:
            tile_c = max(sub_unit, _round_down(tile_c // 2, sub_unit))
        pad_c, pad_l = _ceil_to(tile_c, 8), _ceil_to(tile_l, 128)
    tile_n = max(1, min(N, block_budget // (pad_c * pad_l * itemsize)))
    return tile_n, tile_c, tile_l


def _tiles_2d(rows, cols, itemsize, block_budget):
    row_unit = max(8, 32 // itemsize)
    tile_c = cols if cols < 128 else _round_down(min(cols, 16384), 128)
    if cols >= 256 and pl.cdiv(cols, tile_c) < 2:
        tile_c = max(128, _round_down(cols // 2, 128))
    pad_c = _ceil_to(tile_c, 128)
    rows_budget = max(1, block_budget // (pad_c * itemsize))
    tile_n = max(row_unit, _round_down(rows_budget, row_unit))
    if tile_n >= rows:
        tile_n = rows                             # full extent always legal
    return tile_n, tile_c


# ------------------------------ resident kernels ------------------------------

def _resident3d_kernel(x_ref, g_ref, bt_ref, y_ref, *, eps):
    x = x_ref[...].astype(jnp.float32)                         # (N, C, L)
    n, _, l = x.shape
    inv_m = 1.0 / float(n * l)
    mean = (jnp.sum(jnp.sum(x, axis=0), axis=-1, keepdims=True) * inv_m)[None, :, :]
    xc = x - mean
    var = (jnp.sum(jnp.sum(xc * xc, axis=0), axis=-1, keepdims=True) * inv_m)[None, :, :]
    a = g_ref[...][None, :, :] * jax.lax.rsqrt(var + eps)
    y_ref[...] = (xc * a + bt_ref[...][None, :, :]).astype(y_ref.dtype)


def _resident2d_kernel(x_ref, g_ref, bt_ref, y_ref, *, eps):
    x = x_ref[...].astype(jnp.float32)                         # (N, C)
    inv_m = 1.0 / float(x.shape[0])
    mean = jnp.sum(x, axis=0, keepdims=True) * inv_m
    xc = x - mean
    var = jnp.sum(xc * xc, axis=0, keepdims=True) * inv_m
    y_ref[...] = (xc * (g_ref[...] * jax.lax.rsqrt(var + eps))
                  + bt_ref[...]).astype(y_ref.dtype)


# ------------------------------ tiled 3D kernels -------------------------------

def _stats3d_kernel(x_ref, g_ref, bt_ref, a_ref, b_ref, *,
                    n_total, l_total, tile_n, tile_l, m, eps):
    ni, li = pl.program_id(1), pl.program_id(2)

    @pl.when((ni == 0) & (li == 0))
    def _():
        a_ref[...] = jnp.zeros_like(a_ref)      # accumulates sum(x)
        b_ref[...] = jnp.zeros_like(b_ref)      # accumulates sum(x*x)

    x = x_ref[...].astype(jnp.float32)          # (tile_n, tile_c, tile_l)
    mask = None
    if n_total % tile_n != 0:                   # padded rows in last N block
        rows = jax.lax.broadcasted_iota(jnp.int32, x.shape, 0)
        mask = rows < (n_total - ni * tile_n)
    if l_total % tile_l != 0:                   # padded lanes in last L block
        lanes = jax.lax.broadcasted_iota(jnp.int32, x.shape, 2)
        lm = lanes < (l_total - li * tile_l)
        mask = lm if mask is None else (mask & lm)
    if mask is not None:
        x = jnp.where(mask, x, 0.0)

    xs = jnp.sum(x, axis=0)                                    # VPU adds
    a_ref[...] += jnp.sum(xs, axis=1, keepdims=True)           # (tile_c, 1)
    x2 = jnp.sum(x * x, axis=0)
    b_ref[...] += jnp.sum(x2, axis=1, keepdims=True)

    # Fold the per-channel affine into the finalize step: no extra XLA op or
    # s/ss round-trip between the two pallas_calls.
    @pl.when((ni == pl.num_programs(1) - 1) & (li == pl.num_programs(2) - 1))
    def _():
        s, ss = a_ref[...], b_ref[...]
        mean = s * (1.0 / m)
        var = jnp.maximum(ss * (1.0 / m) - mean * mean, 0.0)
        a = g_ref[...] * jax.lax.rsqrt(var + eps)
        a_ref[...] = a
        b_ref[...] = bt_ref[...] - mean * a


def _norm3d_kernel(x_ref, a_ref, b_ref, y_ref):
    x = x_ref[...].astype(jnp.float32)
    y_ref[...] = (x * a_ref[...][None, :, :]
                  + b_ref[...][None, :, :]).astype(y_ref.dtype)


# ------------------------------ tiled 2D kernels -------------------------------

def _stats2d_kernel(x_ref, s_ref, ss_ref, *, rows_total, tile_rows):
    ni = pl.program_id(1)

    @pl.when(ni == 0)
    def _():
        s_ref[...] = jnp.zeros_like(s_ref)
        ss_ref[...] = jnp.zeros_like(ss_ref)

    x = x_ref[...].astype(jnp.float32)          # (tile_rows, tile_cols)
    if rows_total % tile_rows != 0:
        rows = jax.lax.broadcasted_iota(jnp.int32, x.shape, 0)
        x = jnp.where(rows < (rows_total - ni * tile_rows), x, 0.0)
    s_ref[...] += jnp.sum(x, axis=0, keepdims=True)
    ss_ref[...] += jnp.sum(x * x, axis=0, keepdims=True)


def _norm2d_kernel(x_ref, a_ref, b_ref, y_ref):
    x = x_ref[...].astype(jnp.float32)
    y_ref[...] = (x * a_ref[...] + b_ref[...]).astype(y_ref.dtype)


# ------------------------------ pipelines --------------------------------------

def _bn3d_resident(x, gamma, beta, eps, vmem_limit):
    N, C, L = x.shape
    kern = functools.partial(_resident3d_kernel, eps=float(eps))
    return pl.pallas_call(
        kern,
        out_shape=jax.ShapeDtypeStruct((N, C, L), x.dtype),
        compiler_params=pltpu.CompilerParams(vmem_limit_bytes=vmem_limit),
    )(x, gamma.reshape(C, 1), beta.reshape(C, 1))


def _bn2d_resident(x, gamma, beta, eps, vmem_limit):
    N, C = x.shape
    kern = functools.partial(_resident2d_kernel, eps=float(eps))
    return pl.pallas_call(
        kern,
        out_shape=jax.ShapeDtypeStruct((N, C), x.dtype),
        compiler_params=pltpu.CompilerParams(vmem_limit_bytes=vmem_limit),
    )(x, gamma.reshape(1, C), beta.reshape(1, C))


def _bn3d_tiled(x, gamma, beta, eps, block_budget, vmem_limit):
    N, C, L = x.shape
    tile_n, tile_c, tile_l = _tiles_3d(N, C, L, x.dtype.itemsize, block_budget)
    grid = (pl.cdiv(C, tile_c), pl.cdiv(N, tile_n), pl.cdiv(L, tile_l))
    x_spec = pl.BlockSpec((tile_n, tile_c, tile_l), lambda c, n, l: (n, c, l))
    cvec = pl.BlockSpec((tile_c, 1), lambda c, n, l: (c, 0))
    g2, b2 = gamma.reshape(C, 1), beta.reshape(C, 1)

    stats = functools.partial(
        _stats3d_kernel, n_total=N, l_total=L, tile_n=tile_n, tile_l=tile_l,
        m=float(N * L), eps=float(eps))
    a, b = pl.pallas_call(
        stats,
        out_shape=(jax.ShapeDtypeStruct((C, 1), jnp.float32),
                   jax.ShapeDtypeStruct((C, 1), jnp.float32)),
        grid=grid,
        in_specs=[x_spec, cvec, cvec],
        out_specs=(cvec, cvec),
        compiler_params=pltpu.CompilerParams(
            dimension_semantics=("parallel", "arbitrary", "arbitrary"),
            vmem_limit_bytes=vmem_limit),
    )(x, g2, b2)

    return pl.pallas_call(
        _norm3d_kernel,
        out_shape=jax.ShapeDtypeStruct((N, C, L), x.dtype),
        grid=grid,
        in_specs=[x_spec, cvec, cvec],
        out_specs=x_spec,
        compiler_params=pltpu.CompilerParams(
            dimension_semantics=("parallel", "parallel", "parallel"),
            vmem_limit_bytes=vmem_limit),
    )(x, a, b)


def _stats2d_tiled(x2, block_budget, vmem_limit):
    R, C2 = x2.shape
    tile_n, tile_c = _tiles_2d(R, C2, x2.dtype.itemsize, block_budget)
    grid = (pl.cdiv(C2, tile_c), pl.cdiv(R, tile_n))
    x_spec = pl.BlockSpec((tile_n, tile_c), lambda c, n: (n, c))
    vec = pl.BlockSpec((1, tile_c), lambda c, n: (0, c))
    kern = functools.partial(_stats2d_kernel, rows_total=R, tile_rows=tile_n)
    return pl.pallas_call(
        kern,
        out_shape=(jax.ShapeDtypeStruct((1, C2), jnp.float32),
                   jax.ShapeDtypeStruct((1, C2), jnp.float32)),
        grid=grid,
        in_specs=[x_spec],
        out_specs=(vec, vec),
        compiler_params=pltpu.CompilerParams(
            dimension_semantics=("parallel", "arbitrary"),
            vmem_limit_bytes=vmem_limit),
    )(x2)


def _norm2d_tiled(x2, a, b, block_budget, vmem_limit):
    R, C2 = x2.shape
    tile_n, tile_c = _tiles_2d(R, C2, x2.dtype.itemsize, block_budget)
    grid = (pl.cdiv(C2, tile_c), pl.cdiv(R, tile_n))
    x_spec = pl.BlockSpec((tile_n, tile_c), lambda c, n: (n, c))
    vec = pl.BlockSpec((1, tile_c), lambda c, n: (0, c))
    return pl.pallas_call(
        _norm2d_kernel,
        out_shape=jax.ShapeDtypeStruct((R, C2), x2.dtype),
        grid=grid,
        in_specs=[x_spec, vec, vec],
        out_specs=x_spec,
        compiler_params=pltpu.CompilerParams(
            dimension_semantics=("parallel", "parallel"),
            vmem_limit_bytes=vmem_limit),
    )(x2, a, b)


# ------------------------------ wrapper -----------------------------------------

def _affine_from_stats(s, ss, gamma, beta, m, eps):
    # Biased (training-mode) variance from single-read sum / sum-of-squares,
    # f32 with a clamp against catastrophic cancellation.
    mean = s * (1.0 / m)
    var = jnp.maximum(ss * (1.0 / m) - mean * mean, 0.0)
    a = gamma * jax.lax.rsqrt(var + eps)
    return a, beta - mean * a


def _lane_pack_factor(N, C):
    """Smallest k with N % k == 0 and k*C >= 128 (lane-dense 2D repack)."""
    if C >= 128 or N <= 1:
        return 1
    k0 = pl.cdiv(128, C)
    for k in range(k0, min(N, 8 * k0) + 1):
        if N % k == 0:
            return k
    return 1


def batchnorm1d_forward(x, weight, bias, eps=1e-5, *,
                        max_resident_bytes=None, block_budget_bytes=None):
    """Training-mode BatchNorm1d forward with dynamic feature dim.

    x:      (N, C, L) or (N, C)
    weight: (max_feature_dim,)  -- sliced to C = x.shape[1]
    bias:   (max_feature_dim,)
    """
    if x.ndim not in (2, 3):
        raise ValueError(f"BatchNorm1d expects 2D or 3D input, got shape {x.shape}")
    C = x.shape[1]
    gamma = weight[:C].astype(jnp.float32)
    beta = bias[:C].astype(jnp.float32)
    vmem_limit, resident_budget, block_budget = _budgets(
        max_resident_bytes, block_budget_bytes)

    if x.ndim == 3:
        N, _, L = x.shape
        padded_f32 = N * _ceil_to(C, 8) * _ceil_to(L, 128) * 4   # VMEM layout padding
        if padded_f32 <= resident_budget:
            return _bn3d_resident(x, gamma, beta, eps, vmem_limit)
        if L < 128:
            # Lane-dense repack: (N, C, L) -> (N, C*L) is a free row-major view.
            x2 = x.reshape(N, C * L)
            s, ss = _stats2d_tiled(x2, block_budget, vmem_limit)
            s_c = jnp.sum(s.reshape(C, L), axis=1)
            ss_c = jnp.sum(ss.reshape(C, L), axis=1)
            a_c, b_c = _affine_from_stats(s_c, ss_c, gamma, beta, float(N * L), eps)
            a = jnp.repeat(a_c, L).reshape(1, C * L)
            b = jnp.repeat(b_c, L).reshape(1, C * L)
            y2 = _norm2d_tiled(x2, a, b, block_budget, vmem_limit)
            return y2.reshape(N, C, L)
        return _bn3d_tiled(x, gamma, beta, eps, block_budget, vmem_limit)

    # 2D input (N, C)
    N = x.shape[0]
    padded_f32 = _ceil_to(N, 8) * _ceil_to(C, 128) * 4
    if padded_f32 <= resident_budget:
        return _bn2d_resident(x, gamma, beta, eps, vmem_limit)
    k = _lane_pack_factor(N, C)
    if k > 1:
        # Lane-dense repack: (N, C) -> (N//k, k*C); column j*C + c holds channel c.
        x2 = x.reshape(N // k, k * C)
        s, ss = _stats2d_tiled(x2, block_budget, vmem_limit)
        s_c = jnp.sum(s.reshape(k, C), axis=0)
        ss_c = jnp.sum(ss.reshape(k, C), axis=0)
        a_c, b_c = _affine_from_stats(s_c, ss_c, gamma, beta, float(N), eps)
        a = jnp.tile(a_c, k).reshape(1, k * C)
        b = jnp.tile(b_c, k).reshape(1, k * C)
        y2 = _norm2d_tiled(x2, a, b, block_budget, vmem_limit)
        return y2.reshape(N, C)
    s, ss = _stats2d_tiled(x, block_budget, vmem_limit)
    a, b = _affine_from_stats(s, ss, gamma.reshape(1, C), beta.reshape(1, C),
                              float(N), eps)
    return _norm2d_tiled(x, a, b, block_budget, vmem_limit)


# ------------------------------ reference & test --------------------------------

def _reference(x, weight, bias, eps=1e-5):
    C = x.shape[1]
    if x.ndim == 2:
        g = weight[:C].reshape(1, C); b = bias[:C].reshape(1, C); axes = (0,)
    else:
        g = weight[:C].reshape(1, C, 1); b = bias[:C].reshape(1, C, 1); axes = (0, 2)
    xf = x.astype(jnp.float32)
    mean = jnp.mean(xf, axis=axes, keepdims=True)
    var = jnp.mean((xf - mean) ** 2, axis=axes, keepdims=True)
    return ((xf - mean) * jax.lax.rsqrt(var + eps) * g + b).astype(x.dtype)


def _check(name, y, y_ref, atol=1e-3, rtol=1e-3):
    y = jax.block_until_ready(y)
    assert y.shape == y_ref.shape and y.dtype == y_ref.dtype, f"{name} shape/dtype"
    assert jnp.allclose(y, y_ref, atol=atol, rtol=rtol), f"{name} mismatch vs reference"


if __name__ == "__main__":
    key = jax.random.PRNGKey(0)
    kx, kw, kb, k2, k3, k4, k5, k6 = jax.random.split(key, 8)

    max_feature_dim = 8          # BatchNorm1d(max_feature_dim)
    weight = 1.0 + 0.1 * jax.random.normal(kw, (max_feature_dim,), dtype=jnp.float32)
    bias = 0.1 * jax.random.normal(kb, (max_feature_dim,), dtype=jnp.float32)

    # 1) (N, C, L) with dynamic C < max_feature_dim -> fused VMEM-resident path.
    x = jax.random.normal(kx, (2, 4, 16), dtype=jnp.float32)
    _check("resident 3D", batchnorm1d_forward(x, weight, bias),
           _reference(x, weight, bias))

    # 2) (N, C) input form (dynamic C=6 < 8) -> fused VMEM-resident path.
    x2 = jax.random.normal(k2, (16, 6), dtype=jnp.float32)
    _check("resident 2D", batchnorm1d_forward(x2, weight, bias),
           _reference(x2, weight, bias))

    # The remaining cases force the tiled pipelines at small shapes so every
    # code path (partial blocks, masking, lane-dense repacks) is compiled and
    # verified against the reference.
    w16 = 1.0 + 0.1 * jax.random.normal(kw, (16,), dtype=jnp.float32)
    b16 = 0.1 * jax.random.normal(kb, (16,), dtype=jnp.float32)
    w256 = 1.0 + 0.1 * jax.random.normal(kw, (256,), dtype=jnp.float32)
    b256 = 0.1 * jax.random.normal(kb, (256,), dtype=jnp.float32)

    # 3) tiled 3D path (L >= 128), partial L block.
    x3 = jax.random.normal(k3, (5, 16, 320), dtype=jnp.float32)
    _check("tiled 3D",
           batchnorm1d_forward(x3, w16, b16, max_resident_bytes=0),
           _reference(x3, w16, b16))

    # 4) tiled 3D with partial N and L blocks (tiny block budget -> masking).
    x4 = jax.random.normal(k4, (11, 16, 320), dtype=jnp.float32)
    _check("tiled 3D masked",
           batchnorm1d_forward(x4, w16, b16, max_resident_bytes=0,
                               block_budget_bytes=16 * 1024),
           _reference(x4, w16, b16))

    # 5) tiled 3D small-L -> lane-dense (N, C*L) repack.
    x5 = jax.random.normal(k5, (6, 4, 16), dtype=jnp.float32)
    _check("tiled 3D small-L repack",
           batchnorm1d_forward(x5, weight, bias, max_resident_bytes=0),
           _reference(x5, weight, bias))

    # 6) tiled 2D, C >= 128, partial row blocks.
    x6 = jax.random.normal(k6, (40, 256), dtype=jnp.float32)
    _check("tiled 2D",
           batchnorm1d_forward(x6, w256, b256, max_resident_bytes=0,
                               block_budget_bytes=8 * 1024),
           _reference(x6, w256, b256))

    # 7) tiled 2D small-C -> lane-dense (N//k, k*C) repack.
    x7 = jax.random.normal(kx, (64, 6), dtype=jnp.float32)
    _check("tiled 2D small-C repack",
           batchnorm1d_forward(x7, weight, bias, max_resident_bytes=0),
           _reference(x7, weight, bias))

    print("KERNEL_OK")
</pallas_src>

<mosaic_0001>
module attributes {stable_mosaic.version = 11 : i64} {
  func.func @_resident3d_kernel(%arg0: memref<2x4x16xf32, #tpu.memory_space<vmem>>, %arg1: memref<4x1xf32, #tpu.memory_space<vmem>>, %arg2: memref<4x1xf32, #tpu.memory_space<vmem>>, %arg3: memref<2x4x16xf32, #tpu.memory_space<vmem>>) attributes {dimension_semantics = [], scalar_prefetch = 0 : i64, scratch_operands = 0 : i64, tpu.core_type = #tpu.core_type<tc>} {
    %c0 = arith.constant 0 : index
    %c0_0 = arith.constant 0 : index
    %c0_1 = arith.constant 0 : index
    %0 = vector.load %arg0[%c0, %c0_0, %c0_1] : memref<2x4x16xf32, #tpu.memory_space<vmem>>, vector<2x4x16xf32>
    %cst = arith.constant dense<0.000000e+00> : vector<4x16xf32>
    %1 = vector.multi_reduction <add>, %0, %cst [0] : vector<2x4x16xf32> to vector<4x16xf32>
    %cst_2 = arith.constant dense<0.000000e+00> : vector<4xf32>
    %2 = vector.multi_reduction <add>, %1, %cst_2 [1] : vector<4x16xf32> to vector<4xf32>
    %3 = vector.shape_cast %2 : vector<4xf32> to vector<4x1xf32>
    %cst_3 = arith.constant 3.125000e-02 : f32
    %4 = vector.broadcast %cst_3 : f32 to vector<4x1xf32>
    %5 = arith.mulf %3, %4 : vector<4x1xf32>
    %6 = vector.shape_cast %5 : vector<4x1xf32> to vector<1x4x1xf32>
    %7 = vector.broadcast %6 : vector<1x4x1xf32> to vector<2x4x16xf32>
    %8 = arith.subf %0, %7 : vector<2x4x16xf32>
    %9 = arith.mulf %8, %8 : vector<2x4x16xf32>
    %cst_4 = arith.constant dense<0.000000e+00> : vector<4x16xf32>
    %10 = vector.multi_reduction <add>, %9, %cst_4 [0] : vector<2x4x16xf32> to vector<4x16xf32>
    %cst_5 = arith.constant dense<0.000000e+00> : vector<4xf32>
    %11 = vector.multi_reduction <add>, %10, %cst_5 [1] : vector<4x16xf32> to vector<4xf32>
    %12 = vector.shape_cast %11 : vector<4xf32> to vector<4x1xf32>
    %cst_6 = arith.constant 3.125000e-02 : f32
    %13 = vector.broadcast %cst_6 : f32 to vector<4x1xf32>
    %14 = arith.mulf %12, %13 : vector<4x1xf32>
    %15 = vector.shape_cast %14 : vector<4x1xf32> to vector<1x4x1xf32>
    %c0_7 = arith.constant 0 : index
    %c0_8 = arith.constant 0 : index
    %16 = vector.load %arg1[%c0_7, %c0_8] : memref<4x1xf32, #tpu.memory_space<vmem>>, vector<4x1xf32>
    %17 = vector.shape_cast %16 : vector<4x1xf32> to vector<1x4x1xf32>
    %cst_9 = arith.constant 9.99999974E-6 : f32
    %18 = vector.broadcast %cst_9 : f32 to vector<1x4x1xf32>
    %19 = arith.addf %15, %18 : vector<1x4x1xf32>
    %20 = math.rsqrt %19 : vector<1x4x1xf32>
    %21 = arith.mulf %17, %20 : vector<1x4x1xf32>
    %22 = vector.broadcast %21 : vector<1x4x1xf32> to vector<2x4x16xf32>
    %23 = arith.mulf %8, %22 : vector<2x4x16xf32>
    %c0_10 = arith.constant 0 : index
    %c0_11 = arith.constant 0 : index
    %24 = vector.load %arg2[%c0_10, %c0_11] : memref<4x1xf32, #tpu.memory_space<vmem>>, vector<4x1xf32>
    %25 = vector.shape_cast %24 : vector<4x1xf32> to vector<1x4x1xf32>
    %26 = vector.broadcast %25 : vector<1x4x1xf32> to vector<2x4x16xf32>
    %27 = arith.addf %23, %26 : vector<2x4x16xf32>
    %c0_12 = arith.constant 0 : index
    %c0_13 = arith.constant 0 : index
    %c0_14 = arith.constant 0 : index
    %28 = vector.load %arg3[%c0_12, %c0_13, %c0_14] : memref<2x4x16xf32, #tpu.memory_space<vmem>>, vector<2x4x16xf32>
    tpu.vector_store %arg3[%c0_12, %c0_13, %c0_14], %27 {strides = array<i32>} : memref<2x4x16xf32, #tpu.memory_space<vmem>>, vector<2x4x16xf32>,
    return
  }
}

</mosaic_0001>

<bundles_post_ra>
// kernel: tpu_custom_call.1
= control target key start
LH: loop header
LB: loop body
LE: loop exit
PB: predicated region body
PF: predicated region fallthrough
CT: control target
= control target key end

     0   :  { %vm17_vm0 = vcmask 125952   ;;  %s161_s0 = inlined_call_operand.vmem [shape: f32[2,4,16], index: 0, kind: input, shape index: {}]   ;;  %s162_s1 = inlined_call_operand.vmem [shape: f32[4,1], index: 1, kind: input, shape index: {}]   ;;  %s163_s2 = inlined_call_operand.vmem [shape: f32[4,1], index: 2, kind: input, shape index: {}]   ;;  %s164_s3 = inlined_call_operand.hbm [shape: f32[2,4,16], index: 3, kind: output, shape index: {}]  }
   0x1   :  { %v15_v0 = vld [vmem:[%s161_s0] sm:$0xf]  ;;  %v16_v1 = vld [vmem:[%s161_s0 + $0x4] sm:$0xf] }
   0x2   :  { %v18_v2 = vsel %vm17_vm0, %v15_v0, 0.0  ;;  %v19_v3 = vsel %vm17_vm0, %v16_v1, 0.0 }
   0x3   :  { %8 = vsyncpa [#allocation3], 0  ;;  %v20_v4 = vadd.f32 %v19_v3, %v18_v2  ;;  %v105_v16 = vmov 0   ;;  %v36_v20 = vld [vmem:[%s162_s1] sm:$0xf]  ;;  %s106_s19 = smov [#allocation2]  }
   0x4   :  { %77 = vset.pattern.permute.xlu1 %v105_v16  ;;  %78 = vset.pattern.permute.xlu0 %v105_v16  ;;  %v47_v23 = vld [vmem:[%s163_s2] sm:$0xf]  ;;  %s62_s20 = sshll.u32 %s106_s19, 4  ;;  %s63_s20 = int_to_ptr.vmem [resolvable:$true] %s62_s20 }
   0x5   :  { %v21_v5 = vsel %vm17_vm0, %v20_v4, 0.0  ;;  %s81_s1 = scalar_lea.vmem %s63_s20, 128  ;;  %p86_p1 = scmp.lt.s32.totalorder %s63_s20, %s63_s20 }
   0x6   :  { %22 = vadd.xlane.f32.xlu0 %v21_v5  ;;  %p82_p0 = scmp.ne.s32.totalorder %s63_s20, %s81_s1  ;;  %p87_p2 = scmp.lt.s32.totalorder %s81_s1, %s81_s1 }
   0x8   :  { %p88_p3 = por %p87_p2, %p86_p1 }
   0xa   :  { %p89_p4 = pnand %p88_p3, %p82_p0 }
  0x93   :  { %v23_v6 = vpop.xlane.xlu0 %22 }
  0x94   :  { %v24_v7 = vmul.f32 0.03125, %v23_v6 }
  0x96   :  { %v25_v8 = vsub.f32 %v15_v0, %v24_v7  ;;  %v26_v9 = vsub.f32 %v16_v1, %v24_v7 }
  0x98   :  { %v27_v10 = vmul.f32 %v25_v8, %v25_v8  ;;  %v28_v11 = vmul.f32 %v26_v9, %v26_v9 }
  0x9a   :  { %v29_v12 = vsel %vm17_vm0, %v27_v10, 0.0  ;;  %v30_v13 = vsel %vm17_vm0, %v28_v11, 0.0 }
  0x9b   :  { %v31_v14 = vadd.f32 %v30_v13, %v29_v12 }
  0x9d   :  { %v32_v15 = vsel %vm17_vm0, %v31_v14, 0.0 }
  0x9e   :  { %33 = vadd.xlane.f32.xlu0 %v32_v15 }
 0x12b   :  { %v34_v17 = vpop.xlane.xlu0 %33 }
 0x12c   :  { %v35_v18 = vmul.f32 0.03125, %v34_v17 }
 0x12e   :  { %v37_v19 = vadd.f32 1e-05, %v35_v18 }
 0x130   :  { %79 = vrsqrt.f32 %v37_v19 }
 0x13a   :  { %v80_v21 = vpop.eup %79 }
 0x13b   :  { %v39_v22 = vmul.f32 %v80_v21, %v36_v20 }
 0x13d   :  { %42 = vperm.xlu1 %77, %v39_v22  }
 0x141   :  { %50 = vperm.xlu1 %77, %v47_v23  }
 0x1bc   :  { %v43_v24 = vpop.permute.xlu1 %42 }
 0x1bd   :  { %v45_v25 = vmul.f32 %v43_v24, %v25_v8  ;;  %v46_v26 = vmul.f32 %v43_v24, %v26_v9 }
 0x1c0   :  { %v51_v27 = vpop.permute.xlu1 %50 }
 0x1c1   :  { %v53_v28 = vadd.f32 %v51_v27, %v45_v25  ;;  %v54_v29 = vadd.f32 %v51_v27, %v46_v26 }
 0x1c3   :  { %55 = vst.msk [vmem:[#allocation2] sm:$0xf] %vm17_vm0, %v53_v28  ;;  %56 = vst.msk [vmem:[#allocation2 + $0x4] sm:$0xf] %vm17_vm0, %v54_v29 }
 0x1c4   :  { %92 = shalt.err (!%p89_p4)
}
 0x1c5   :  { %s93_s22 = scalar_lea.hbm %s164_s3, 128 }
 0x1c6   :  { %p94_p5 = scmp.ne.s32.totalorder %s164_s3, %s93_s22  ;;  %p97_p6 = scmp.lt.u32.totalorder %s93_s22, %s164_s3 }
 0x1c8   :  { %p99_p7 = pnand %p97_p6, %p94_p5 }
 0x1ca   :  { %102 = shalt.err (!%p99_p7)
}
 0x1cb   :  { %s107_s27 = smov 64   ;;  %s108_s28 = smov 4  }
 0x1cc   :  { %68 = dma.vmem_to_hbm [thread:$0]  %s63_s20, 128, %s164_s3, [#allocation3], %s107_s27, %s107_s27, %s108_s28  }
 0x1cd   :  { %103 = dma.done.wait [#allocation3], 128  }
 0x1ce   :  { %104 = vsyncadd [#allocation3], 4294967168 }
 0x1cf   :  { %72 = vsyncpa [#allocation3], 1 }

</bundles_post_ra>
